<compile_context>
chip_gen: v7x
topology: tpu7x:2x2x1
jax: 0.10.0
libtpu: 0.0.40
codegen_flags: <defaults>
</compile_context>

<pallas_src>
import numpy as np
import jax
import jax.numpy as jnp
from jax import lax
from jax.experimental import pallas as pl
from jax.experimental.pallas import tpu as pltpu


# --------------------------- generation-aware sizing ------------------------

def _vmem_limit_bytes():
    try:
        cap = int(pltpu.get_tpu_info().vmem_capacity_bytes)
    except Exception:
        cap = 64 * 1024 * 1024          # conservative fallback (v7x-sized)
    return max(32 * 1024 * 1024, min((cap * 3) // 4, 112 * 1024 * 1024))


def _pick_block_n(N, B, K, D, P, vmem_limit):
    """Largest N-tile whose double-buffered I/O + live temporaries fit VMEM."""
    def footprint_bytes(bn):
        io = 2 * (bn * (2 * D + K * 3 * D + P)     # double-buffered inputs
                  + bn * (P + K * D))              # double-buffered outputs
        tmp = 8 * bn * K * D                       # live f32 temps (h/pos/g/hg/logits/e/attn/...)
        return 4 * (io + tmp)

    cands = [bn for bn in (2048, 1024, 512, 256, 128, 64, 32, 16, 8)
             if bn <= N and N % bn == 0]
    if not cands:
        return N
    budget = int(0.55 * vmem_limit)
    block_n = cands[-1]
    for bn in cands:
        if footprint_bytes(bn) <= budget:
            block_n = bn
            break
    # v7x has 2 TensorCores per chip: keep the parallel grid at >= 2 steps.
    if B * (N // block_n) < 2:
        smaller = [bn for bn in cands if bn < block_n]
        if smaller:
            block_n = smaller[0]
    return block_n


# ------------------------------ Pallas kernels ------------------------------

def _proj_kernel(feat_ref, xyz_ref, wqkv_ref, bqkv_ref, wd1_ref,
                 qxp_ref, kvx_ref):
    # feat: (1, bn, P); xyz: (1, bn, 3)
    # wqkv: (P, 3D) = w1 @ [wq|wk|wv] (fc1 folded by linearity); bqkv: (1, 3D)
    # qxp out: (1, bn, 2D) = [q  | xyz@wd1]   (stays un-gathered)
    # kvx out: (1, bn, 3D) = [k | v | xyz@wd1] (single gatherable slab)
    D = wd1_ref.shape[1]
    qkv = jnp.dot(feat_ref[0], wqkv_ref[...],
                  preferred_element_type=jnp.float32) + bqkv_ref[...]
    xp = jnp.dot(xyz_ref[0], wd1_ref[...], preferred_element_type=jnp.float32)
    qxp_ref[0] = jnp.concatenate([qkv[:, :D], xp], axis=-1)
    kvx_ref[0] = jnp.concatenate([qkv[:, D:], xp], axis=-1)


def _attn_kernel(qxp_ref, kvxg_ref, pre_ref,
                 bd1_ref, wd2_ref, bd2_ref,
                 wg1_ref, bg1_ref, wg2_ref, bg2_ref,
                 w2_ref, b2_ref,
                 res_ref, attn_ref):
    # qxp: (1, bn, 2D); kvxg: (1, bn, K, 3D) point-major gathered [k|v|xp]
    # pre: (1, bn, P);  res: (1, bn, P);  attn: (1, bn, K, D) -- final layout.
    _, bn, K, threeD = kvxg_ref.shape
    D = threeD // 3
    inv_scale = 1.0 / float(np.sqrt(D))

    # Weight / bias loads hoisted: read once, reused by the stacked matmuls.
    bd1 = bd1_ref[...]
    wd2 = wd2_ref[...]
    bd2 = bd2_ref[...]
    wg1 = wg1_ref[...]
    bg1 = bg1_ref[...]
    wg2 = wg2_ref[...]
    bg2 = bg2_ref[...]
    w2 = w2_ref[...]
    b2 = b2_ref[...]

    qxp = qxp_ref[0]                              # (bn, 2D)
    q = qxp[:, :D]
    xp = qxp[:, D:]
    kvxg = kvxg_ref[0]                            # (bn, K, 3D)
    kg = kvxg[:, :, :D]
    vg = kvxg[:, :, D:2 * D]
    xg = kvxg[:, :, 2 * D:]

    # fc_delta: ReLU((xyz - knn_xyz) @ wd1 + bd1) @ wd2 + bd2.
    # Layer-1 is folded through the gather by linearity: (xyz@wd1) - gather(xyz@wd1).
    # Per-neighbor matmuls are stacked into one (bn*K, D) x (D, D) MXU matmul.
    h = jnp.maximum(xp[:, None, :] - xg + bd1, 0.0)                     # (bn, K, D)
    pos = (jnp.dot(h.reshape(bn * K, D), wd2,
                   preferred_element_type=jnp.float32) + bd2).reshape(bn, K, D)

    # fc_gamma on (q - k + pos): two stacked (bn*K, D) matmuls.
    g_in = (q[:, None, :] - kg + pos).reshape(bn * K, D)
    hg = jnp.maximum(jnp.dot(g_in, wg1,
                             preferred_element_type=jnp.float32) + bg1, 0.0)
    logits = ((jnp.dot(hg, wg2, preferred_element_type=jnp.float32) + bg2)
              * inv_scale).reshape(bn, K, D)

    # Softmax over the neighbor axis (K lives on sublanes).
    m = jnp.max(logits, axis=1, keepdims=True)
    e = jnp.exp(logits - m)
    s = jnp.sum(e, axis=1, keepdims=True)
    # approx=True would route the divide to the (idle) EUP; kept exact to hold
    # the 1e-4 f32 parity check.
    attn = e * pl.reciprocal(s, approx=False)
    attn_ref[0] = attn                            # already (N, K, D): no XLA transpose pass

    res = jnp.sum(attn * (vg + pos), axis=1)      # (bn, D)
    res_ref[0] = (jnp.dot(res, w2, preferred_element_type=jnp.float32)
                  + b2 + pre_ref[0])


# -------------------------------- wrappers -----------------------------------

def _project(features, xyz, w1qkv, b1qkv, wd1, block_n, vmem_limit):
    B, N, P = features.shape
    D = wd1.shape[1]
    full2 = lambda b, n: (0, 0)
    return pl.pallas_call(
        _proj_kernel,
        grid=(B, N // block_n),
        in_specs=[
            pl.BlockSpec((1, block_n, P), lambda b, n: (b, n, 0)),
            pl.BlockSpec((1, block_n, 3), lambda b, n: (b, n, 0)),
            pl.BlockSpec((P, 3 * D), full2),
            pl.BlockSpec((1, 3 * D), full2),
            pl.BlockSpec((3, D), full2),
        ],
        out_specs=[
            pl.BlockSpec((1, block_n, 2 * D), lambda b, n: (b, n, 0)),
            pl.BlockSpec((1, block_n, 3 * D), lambda b, n: (b, n, 0)),
        ],
        out_shape=[
            jax.ShapeDtypeStruct((B, N, 2 * D), jnp.float32),
            jax.ShapeDtypeStruct((B, N, 3 * D), jnp.float32),
        ],
        compiler_params=pltpu.CompilerParams(
            dimension_semantics=("parallel", "parallel"),
            vmem_limit_bytes=vmem_limit),
    )(features, xyz, w1qkv, b1qkv, wd1)


def _attention(qxp, kvx_g, pre, p, block_n, vmem_limit):
    B, N, K, threeD = kvx_g.shape
    D = threeD // 3
    P = pre.shape[-1]
    full2 = lambda b, n: (0, 0)
    return pl.pallas_call(
        _attn_kernel,
        grid=(B, N // block_n),
        in_specs=[
            pl.BlockSpec((1, block_n, 2 * D), lambda b, n: (b, n, 0)),
            pl.BlockSpec((1, block_n, K, 3 * D), lambda b, n: (b, n, 0, 0)),
            pl.BlockSpec((1, block_n, P), lambda b, n: (b, n, 0)),
            pl.BlockSpec((1, D), full2),   # bd1
            pl.BlockSpec((D, D), full2),   # wd2
            pl.BlockSpec((1, D), full2),   # bd2
            pl.BlockSpec((D, D), full2),   # wg1
            pl.BlockSpec((1, D), full2),   # bg1
            pl.BlockSpec((D, D), full2),   # wg2
            pl.BlockSpec((1, D), full2),   # bg2
            pl.BlockSpec((D, P), full2),   # w2
            pl.BlockSpec((1, P), full2),   # b2
        ],
        out_specs=[
            pl.BlockSpec((1, block_n, P), lambda b, n: (b, n, 0)),
            pl.BlockSpec((1, block_n, K, D), lambda b, n: (b, n, 0, 0)),
        ],
        out_shape=[jax.ShapeDtypeStruct((B, N, P), jnp.float32),
                   jax.ShapeDtypeStruct((B, N, K, D), jnp.float32)],
        compiler_params=pltpu.CompilerParams(
            dimension_semantics=("parallel", "parallel"),
            vmem_limit_bytes=vmem_limit),
    )(qxp, kvx_g, pre,
      p["bd1"], p["wd2"], p["bd2"],
      p["wg1"], p["bg1"], p["wg2"], p["bg2"],
      p["w2"], p["b2"])


# ------------------------------ plain-JAX glue -------------------------------

def square_distance(src, dst):
    diff = src[:, :, None, :] - dst[:, None, :, :]
    return jnp.sum(diff * diff, axis=-1)


def index_points(points, idx):
    # points: (B, N, C), idx: (B, ...) of point indices -> (B, ..., C)
    return jax.vmap(lambda p, i: p[i])(points, idx)


def knn_indices(xyz, k):
    # ||a-b||^2 = ||a||^2 + ||b||^2 - 2 a.b : one MXU matmul instead of the
    # (B,N,N,3) broadcast-diff; top_k instead of a full O(N log N) argsort.
    sq = jnp.sum(xyz * xyz, axis=-1)
    d = sq[:, :, None] + sq[:, None, :] - 2.0 * jnp.einsum(
        "bnd,bmd->bnm", xyz, xyz)
    _, idx = lax.top_k(-d, k)
    return idx                                     # (B, N, K)


def transformer_block_pallas(xyz, features, p, k, block_n=None):
    B, N, P = features.shape
    D = p["wq"].shape[0]

    vmem_limit = _vmem_limit_bytes()
    if block_n is None:
        block_n = _pick_block_n(N, B, k, D, P, vmem_limit)
    assert N % block_n == 0

    # TODO(synk): kNN + the dynamic neighbor gather stay in plain-JAX glue; an
    # in-kernel scalar-prefetch DMA gather would avoid materializing the
    # gathered (B,N,K,3D) tensor in HBM but has no cheap Pallas TPU equivalent.
    knn_idx = knn_indices(xyz, k)                           # (B, N, K)

    # fc1 folded into the fused QKV weight by linearity (no nonlinearity in fc1).
    wqkv = jnp.concatenate([p["wq"], p["wk"], p["wv"]], axis=1)   # (D, 3D)
    w1qkv = p["w1"] @ wqkv                                        # (P, 3D)
    b1qkv = p["b1"] @ wqkv                                        # (1, 3D)

    qxp, kvx = _project(features, xyz, w1qkv, b1qkv, p["wd1"],
                        block_n, vmem_limit)                 # (B,N,2D), (B,N,3D)
    kvx_g = index_points(kvx, knn_idx)                       # (B,N,K,3D): one gather

    res, attn = _attention(qxp, kvx_g, features, p, block_n, vmem_limit)
    return res, attn


# -------------------------------- reference ----------------------------------

def transformer_block_ref(xyz, features, p, k):
    dists = square_distance(xyz, xyz)
    knn_idx = jnp.argsort(dists, axis=-1)[:, :, :k]
    knn_xyz = index_points(xyz, knn_idx)
    pre = features
    x = features @ p["w1"] + p["b1"]
    q = x @ p["wq"]
    kk = index_points(x @ p["wk"], knn_idx)
    v = index_points(x @ p["wv"], knn_idx)
    delta = xyz[:, :, None, :] - knn_xyz
    pos = jnp.maximum(delta @ p["wd1"] + p["bd1"], 0.0) @ p["wd2"] + p["bd2"]
    g = jnp.maximum((q[:, :, None] - kk + pos) @ p["wg1"] + p["bg1"], 0.0) @ p["wg2"] + p["bg2"]
    attn = jax.nn.softmax(g / np.sqrt(g.shape[-1]), axis=-2)
    res = jnp.einsum("bmnf,bmnf->bmf", attn, v + pos)
    res = res @ p["w2"] + p["b2"] + pre
    return res, attn


def init_params(key, d_points, d_model):
    keys = jax.random.split(key, 15)
    w = lambda kk, shape: (0.1 * jax.random.normal(kk, shape)).astype(jnp.float32)
    # Linear weights stored as (in, out)  (transposed vs. PyTorch's (out, in))
    return {
        "w1": w(keys[0], (d_points, d_model)), "b1": w(keys[1], (1, d_model)),
        "wq": w(keys[2], (d_model, d_model)),
        "wk": w(keys[3], (d_model, d_model)),
        "wv": w(keys[4], (d_model, d_model)),
        "wd1": w(keys[5], (3, d_model)),       "bd1": w(keys[6], (1, d_model)),
        "wd2": w(keys[7], (d_model, d_model)), "bd2": w(keys[8], (1, d_model)),
        "wg1": w(keys[9], (d_model, d_model)), "bg1": w(keys[10], (1, d_model)),
        "wg2": w(keys[11], (d_model, d_model)), "bg2": w(keys[12], (1, d_model)),
        "w2": w(keys[13], (d_model, d_points)), "b2": w(keys[14], (1, d_points)),
    }


if __name__ == "__main__":
    B, N, d_points, d_model, K = 2, 16, 8, 32, 4
    key = jax.random.PRNGKey(0)
    k_xyz, k_feat, k_par = jax.random.split(key, 3)
    xyz = jax.random.normal(k_xyz, (B, N, 3), dtype=jnp.float32)
    features = jax.random.normal(k_feat, (B, N, d_points), dtype=jnp.float32)
    params = init_params(k_par, d_points, d_model)

    res, attn = transformer_block_pallas(xyz, features, params, K)
    jax.block_until_ready((res, attn))

    res_ref, attn_ref = transformer_block_ref(xyz, features, params, K)
    assert res.shape == (B, N, d_points) and attn.shape == (B, N, K, d_model)

    ok = (np.allclose(np.asarray(res), np.asarray(res_ref), atol=1e-4, rtol=1e-4)
          and np.allclose(np.asarray(attn), np.asarray(attn_ref), atol=1e-4, rtol=1e-4))
    if ok:
        print("KERNEL_OK")
    else:
        print("MISMATCH", float(jnp.max(jnp.abs(res - res_ref))),
              float(jnp.max(jnp.abs(attn - attn_ref))))
</pallas_src>

<mosaic_0001>
module attributes {stable_mosaic.version = 11 : i64} {
  func.func @_proj_kernel(%arg0: i32, %arg1: i32, %arg2: memref<1x16x8xf32, #tpu.memory_space<vmem>>, %arg3: memref<1x16x3xf32, #tpu.memory_space<vmem>>, %arg4: memref<8x96xf32, #tpu.memory_space<vmem>>, %arg5: memref<1x96xf32, #tpu.memory_space<vmem>>, %arg6: memref<3x32xf32, #tpu.memory_space<vmem>>, %arg7: memref<1x16x64xf32, #tpu.memory_space<vmem>>, %arg8: memref<1x16x96xf32, #tpu.memory_space<vmem>>) attributes {dimension_semantics = [#tpu.dimension_semantics<parallel>, #tpu.dimension_semantics<parallel>], iteration_bounds = array<i64: 2, 1>, scalar_prefetch = 0 : i64, scratch_operands = 0 : i64, tpu.core_type = #tpu.core_type<tc>, window_params = [{transform_indices = @transform_0, window_bounds = array<i64: 1, 16, 8>}, {transform_indices = @transform_1, window_bounds = array<i64: 1, 16, 3>}, {pipeline_mode = #tpu.pipeline_mode<synchronous>, transform_indices = @transform_2, window_bounds = array<i64: 8, 96>}, {pipeline_mode = #tpu.pipeline_mode<synchronous>, transform_indices = @transform_3, window_bounds = array<i64: 1, 96>}, {pipeline_mode = #tpu.pipeline_mode<synchronous>, transform_indices = @transform_4, window_bounds = array<i64: 3, 32>}, {transform_indices = @transform_5, window_bounds = array<i64: 1, 16, 64>}, {transform_indices = @transform_6, window_bounds = array<i64: 1, 16, 96>}]} {
    %c0 = arith.constant 0 : index
    %c0_0 = arith.constant 0 : index
    %c0_1 = arith.constant 0 : index
    %0 = vector.load %arg2[%c0, %c0_0, %c0_1] : memref<1x16x8xf32, #tpu.memory_space<vmem>>, vector<1x16x8xf32>
    %1 = vector.shape_cast %0 : vector<1x16x8xf32> to vector<16x8xf32>
    %c0_2 = arith.constant 0 : index
    %c0_3 = arith.constant 0 : index
    %2 = vector.load %arg4[%c0_2, %c0_3] : memref<8x96xf32, #tpu.memory_space<vmem>>, vector<8x96xf32>
    %cst = arith.constant dense<0.000000e+00> : vector<16x96xf32>
    %3 = tpu.matmul %1, %2, %cst {dimension_numbers = #tpu.dot_dimension_numbers<[1], [0], [0], [1], [0, 0, 1, 1], [], []>} : vector<16x8xf32>, vector<8x96xf32>, vector<16x96xf32> -> vector<16x96xf32>
    %c0_4 = arith.constant 0 : index
    %c0_5 = arith.constant 0 : index
    %4 = vector.load %arg5[%c0_4, %c0_5] : memref<1x96xf32, #tpu.memory_space<vmem>>, vector<1x96xf32>
    %5 = vector.broadcast %4 : vector<1x96xf32> to vector<16x96xf32>
    %6 = arith.addf %3, %5 : vector<16x96xf32>
    %c0_6 = arith.constant 0 : index
    %c0_7 = arith.constant 0 : index
    %c0_8 = arith.constant 0 : index
    %7 = vector.load %arg3[%c0_6, %c0_7, %c0_8] : memref<1x16x3xf32, #tpu.memory_space<vmem>>, vector<1x16x3xf32>
    %8 = vector.shape_cast %7 : vector<1x16x3xf32> to vector<16x3xf32>
    %c0_9 = arith.constant 0 : index
    %c0_10 = arith.constant 0 : index
    %9 = vector.load %arg6[%c0_9, %c0_10] : memref<3x32xf32, #tpu.memory_space<vmem>>, vector<3x32xf32>
    %cst_11 = arith.constant dense<0.000000e+00> : vector<16x32xf32>
    %10 = tpu.matmul %8, %9, %cst_11 {dimension_numbers = #tpu.dot_dimension_numbers<[1], [0], [0], [1], [0, 0, 1, 1], [], []>} : vector<16x3xf32>, vector<3x32xf32>, vector<16x32xf32> -> vector<16x32xf32>
    %11 = vector.extract_strided_slice %6 {offsets = [0, 0], sizes = [16, 32], strides = [1, 1]} : vector<16x96xf32> to vector<16x32xf32>
    %12 = tpu.concatenate %11, %10 in 1 : vector<16x32xf32>, vector<16x32xf32> -> vector<16x64xf32>
    %c0_12 = arith.constant 0 : index
    %c0_13 = arith.constant 0 : index
    %c0_14 = arith.constant 0 : index
    %13 = vector.load %arg7[%c0_12, %c0_13, %c0_14] : memref<1x16x64xf32, #tpu.memory_space<vmem>>, vector<1x16x64xf32>
    %14 = vector.shape_cast %13 : vector<1x16x64xf32> to vector<16x64xf32>
    %15 = vector.shape_cast %12 : vector<16x64xf32> to vector<1x16x64xf32>
    tpu.vector_store %arg7[%c0_12, %c0_13, %c0_14], %15 {strides = array<i32>} : memref<1x16x64xf32, #tpu.memory_space<vmem>>, vector<1x16x64xf32>,
    %16 = vector.extract_strided_slice %6 {offsets = [0, 32], sizes = [16, 64], strides = [1, 1]} : vector<16x96xf32> to vector<16x64xf32>
    %17 = tpu.concatenate %16, %10 in 1 : vector<16x64xf32>, vector<16x32xf32> -> vector<16x96xf32>
    %c0_15 = arith.constant 0 : index
    %c0_16 = arith.constant 0 : index
    %c0_17 = arith.constant 0 : index
    %18 = vector.load %arg8[%c0_15, %c0_16, %c0_17] : memref<1x16x96xf32, #tpu.memory_space<vmem>>, vector<1x16x96xf32>
    %19 = vector.shape_cast %18 : vector<1x16x96xf32> to vector<16x96xf32>
    %20 = vector.shape_cast %17 : vector<16x96xf32> to vector<1x16x96xf32>
    tpu.vector_store %arg8[%c0_15, %c0_16, %c0_17], %20 {strides = array<i32>} : memref<1x16x96xf32, #tpu.memory_space<vmem>>, vector<1x16x96xf32>,
    return
  }
  func.func @transform_0(%arg0: i32, %arg1: i32) -> (i32, i32, i32) {
    %c0_i32 = arith.constant 0 : i32
    %c0_i32_0 = arith.constant 0 : i32
    return %arg0, %arg1, %c0_i32 : i32, i32, i32
  }
  func.func @transform_1(%arg0: i32, %arg1: i32) -> (i32, i32, i32) {
    %c0_i32 = arith.constant 0 : i32
    %c0_i32_0 = arith.constant 0 : i32
    return %arg0, %arg1, %c0_i32 : i32, i32, i32
  }
  func.func @transform_2(%arg0: i32, %arg1: i32) -> (i32, i32) {
    %c0_i32 = arith.constant 0 : i32
    %c0_i32_0 = arith.constant 0 : i32
    %c0_i32_1 = arith.constant 0 : i32
    return %c0_i32, %c0_i32_0 : i32, i32
  }
  func.func @transform_3(%arg0: i32, %arg1: i32) -> (i32, i32) {
    %c0_i32 = arith.constant 0 : i32
    %c0_i32_0 = arith.constant 0 : i32
    %c0_i32_1 = arith.constant 0 : i32
    return %c0_i32, %c0_i32_0 : i32, i32
  }
  func.func @transform_4(%arg0: i32, %arg1: i32) -> (i32, i32) {
    %c0_i32 = arith.constant 0 : i32
    %c0_i32_0 = arith.constant 0 : i32
    %c0_i32_1 = arith.constant 0 : i32
    return %c0_i32, %c0_i32_0 : i32, i32
  }
  func.func @transform_5(%arg0: i32, %arg1: i32) -> (i32, i32, i32) {
    %c0_i32 = arith.constant 0 : i32
    %c0_i32_0 = arith.constant 0 : i32
    return %arg0, %arg1, %c0_i32 : i32, i32, i32
  }
  func.func @transform_6(%arg0: i32, %arg1: i32) -> (i32, i32, i32) {
    %c0_i32 = arith.constant 0 : i32
    %c0_i32_0 = arith.constant 0 : i32
    return %arg0, %arg1, %c0_i32 : i32, i32, i32
  }
}

</mosaic_0001>

<bundles_post_ra>
// kernel: tpu_custom_call.1
= control target key start
LH: loop header
LB: loop body
LE: loop exit
PB: predicated region body
PF: predicated region fallthrough
CT: control target
= control target key end

     0   :  { %12 = vsyncpa [#allocation3], 0  ;;  %s1164_s0 = inlined_call_operand.vmem [shape: f32[2,16,8], index: 0, kind: input, shape index: {}]   ;;  %s1165_s1 = inlined_call_operand.vmem [shape: f32[2,16,3], index: 1, kind: input, shape index: {}]   ;;  %s1166_s2 = inlined_call_operand.vmem [shape: f32[8,96], index: 2, kind: input, shape index: {}]   ;;  %s1167_s3 = inlined_call_operand.vmem [shape: f32[1,96], index: 3, kind: input, shape index: {}]   ;;  %s1168_s4 = inlined_call_operand.vmem [shape: f32[3,32], index: 4, kind: input, shape index: {}]   ;;  %s1169_s5 = inlined_call_operand.hbm [shape: f32[2,16,64], index: 5, kind: output, shape index: {0}]   ;;  %s1170_s6 = inlined_call_operand.hbm [shape: f32[2,16,96], index: 6, kind: output, shape index: {1}]  }
   0x1   :  { %14 = vsyncpa [#allocation3 + $0x1], 0 }
   0x2   :  { %15 = vsyncpa [#allocation5], 0 }
   0x3   :  { %17 = vsyncpa [#allocation5 + $0x1], 0  ;;  %s980_s21 = smov 0   ;;  %s982_s22 = smov 0  }
   0x4   :  { %s984_s23 = smov 0   ;;  %s986_s24 = smov 0  }
   0x5   :  { %s988_s25 = smov 0   ;;  %s990_s26 = smov 0  }
   0x6 LB: > { %s716_s27 = sadd.s32 4294967295, %s936_s26   ;;  %s717_s28 = sadd.s32 4294967294, %s936_s26   ;;  %s936_s26 = sphi %s990_s26, %s23_s26   ;;  %s932_s25 = sphi %s988_s25, %s1179_s25   ;;  %s928_s24 = sphi %s986_s24, %s1178_s24   ;;  %s924_s23 = sphi %s984_s23, %s1177_s23   ;;  %s920_s22 = sphi %s982_s22, %s1176_s22   ;;  %s916_s21 = sphi %s980_s21, %s1175_s21  }
   0x7   : > { %s35_s29 = sadd.s32 1, %s932_s25  ;;  %s163_s30 = sadd.s32 1, %s924_s23 }
   0x8   : > { %p37_p0 = scmp.ge.s32.totalorder %s35_s29, 2  ;;  %p173_p1 = scmp.ne.s32.totalorder %s924_s23, %s920_s22 }
   0x9   : > { %p174_p2 = scmp.eq.s32.totalorder %s716_s27, 1  ;;  %p179_p3 = scmp.ne.s32.totalorder %s920_s22, %s916_s21 }
   0xa   : > { %s1181_s29 = smov (%p37_p0, %s35_s29), 0  ;;  %p180_p5 = scmp.eq.s32.totalorder %s717_s28, 1 }
   0xb   : > { %p1020_p4 = por %p174_p2, %p173_p1  ;;  %s158_s8 = ssub.s32 %s932_s25, %s1181_s29 }
   0xc   : > { %p720_p6 = scmp.ge.s32.totalorder %s936_s26, 1  ;;  %p161_p7 = scmp.eq.s32.totalorder %s158_s8, 0 }
   0xd   : > { %p1027_p8 = por %p180_p5, %p179_p3  ;;  %p261_p9 = scmp.lt.s32.totalorder %s936_s26, 3 }
   0xe   : > { %s1033_s10 = scalar_select %p161_p7, %s924_s23, %s163_s30  }
   0xf   : > { %p262_p10 = pnand %p720_p6, %p261_p9 }
  0x10   : > { %v333_v0 = vld [vmem:[%s1166_s2] sm:$0xff] (!%p262_p10)  ;;  %vm433_vm0 = vcmask (!%p262_p10), 1042432   ;;  %p310_p11 = scmp.lt.s32.totalorder (!%p262_p10), %s928_s24, 1  ;;  %vm341_vm1 = vcmask (!%p262_p10), 64512   ;;  %vm426_vm2 = vcmask (!%p262_p10), 23552   ;;  %s938_s11 = smov (!%p262_p10), 32  }
  0x11   : > { %265 = sbr.rel (%p262_p10) target bundleno = 402 (0x192), region = 40  ;;  %v425_v1 = vld [vmem:[%s1168_s4] sm:$0x7] (!%p262_p10)  ;;  %751 = vmatprep.subr.mxu0 (!%p262_p10), %v333_v0  ;;  %s939_s12 = smov (!%p262_p10), 96   ;;  %vm520_vm3 = vcmask (!%p262_p10), 261120   ;;  %vm523_vm4 = vcmask (!%p262_p10), 523264  }
  0x12   : > { %756 = vmatprep.subr.msk.mxu1 (!%p262_p10), %vm433_vm0, %v425_v1  ;;  %752 = vmatpush3.msra.mxu0 (!%p262_p10), %v333_v0  ;;  %v727_v6 = vld [vmem:[%s1167_s3] ss:$0 sm:$0xff] (!%p262_p10)  ;;  %s940_s13 = smov (!%p262_p10), 64   ;;  %s1053_s14 = sand.u32 (!%p262_p10), 1, %s920_s22   ;;  %vm542_vm5 = vcmask (!%p262_p10), 785408  }
  0x13   : > { %757 = vmatpush3.msk.msra.mxu1 (!%p262_p10), %vm433_vm0, %v425_v1  ;;  %s1171_s18 = sshll.u32 (!%p262_p10), %s928_s24, 8  ;;  %s546_s8 = scalar_lea.sflag (!%p262_p10), [#allocation3], %s1053_s14 }
  0x14   : > { %s1065_s27 = scalar_lea.hbm (!%p262_p10), %s1169_s5, %s1171_s18 }
  0x18   : > { %s311_s15 = scalar_select %p310_p11, %s928_s24, 1 }
  0x1a   : > { %s741_s16 = sshll.u32 %s311_s15, 4  ;;  %s721_s15 = sshll.u32 %s1053_s14, 4 }
  0x1b   : > { %s317_s19 = scalar_lea.vmem %s1164_s0, %s741_s16  ;;  %s327_s28 = scalar_lea.vmem %s1165_s1, %s741_s16 }
  0x1c   : > { %v331_v2 = vld [vmem:[%s317_s19] sm:$0xff]  ;;  %v332_v3 = vld [vmem:[%s317_s19 + $0x8] sm:$0xff]  ;;  %s301_s16 = scalar_lea.vmem [#allocation2], %s721_s15 }
  0x1d   : > { %v423_v4 = vld [vmem:[%s327_s28] sm:$0xff]  ;;  %753 = vmatprep.mubr.msk.f32.mxu0 %vm341_vm1, %v331_v2  ;;  %v424_v5 = vld [vmem:[%s327_s28 + $0x8] sm:$0xff]  ;;  %s566_s17 = sshll.u32 %s301_s16, 4  ;;  %s1068_s28 = scalar_lea.vmem [#allocation4], %s721_s15  ;;  %s1058_s17 = int_to_ptr.vmem [resolvable:$true] %s566_s17 }
  0x1e   : > { %758 = vmatprep.mubr.msk.f32.mxu1 %vm426_vm2, %v423_v4  ;;  %754 = vmatmul.mubr.msk.f32.vlgmr.msra.gmra.mrb[0].mxu0 %vm341_vm1, %v332_v3  ;;  %s584_s30 = sshll.u32 %s1068_s28, 4  ;;  %s1101_s30 = int_to_ptr.vmem [resolvable:$true] %s584_s30 }
  0x1f   : > { %759 = vmatmul.mubr.msk.f32.vlgmr.msra.gmra.mrb[0].mxu1 %vm426_vm2, %v424_v5 }
  0xf1   : > { %v755_v7 = vpop.f32.mrb[0].mxu0 }
  0xf2   : > { %v760_v8 = vpop.f32.mrb[0].mxu1  ;;  %v420_v9 = vadd.f32 %v755_v7, %v727_v6  ;;  %v414_v10 = vpop.f32.mrb[1].mxu0 }
  0xf3   : > { %516 = vrot.lane.b32.xlu0 %v760_v8, %s938_s11  ;;  %v503_v11 = vpop.f32.mrb[1].mxu1  ;;  %v415_v12 = vadd.f32 %v727_v6, %v414_v10 }
  0xf4   : > { %530 = vrot.lane.b32.xlu1 %v420_v9, %s939_s12 }
  0xf7   : > { %514 = vrot.lane.b32.xlu0 %v503_v11, %s938_s11  ;;  %s826_s11 = scalar_lea.vmem %s1058_s17, 256 }
  0xf8   : > { %528 = vrot.lane.b32.xlu1 %v415_v12, %s939_s12  ;;  %p827_p12 = scmp.ne.s32.totalorder %s1058_s17, %s826_s11  ;;  %s941_s12 = smov [#allocation2]  }
  0xfa   : > { %p828_p13 = pnand %p827_p12, %p1020_p4 }
  0xfb   : > { %534 = vrot.lane.b32.xlu0 %v503_v11, %s940_s13 }
  0xfc   : > { %536 = vrot.lane.b32.xlu1 %v760_v8, %s940_s13  ;;  %p829_p0 = pneg %p828_p13  ;;  %s830_s13 = sshll.u32 %s941_s12, 4  ;;  %s831_s13 = int_to_ptr.vmem [resolvable:$false] %s830_s13 }
  0xfd   : > { %s832_s19 = scalar_lea.vmem %s831_s13, 512  ;;  %p833_p1 = scmp.lt.s32.totalorder %s1058_s17, %s831_s13 }
  0xfe   : > { %p834_p2 = scmp.lt.s32.totalorder %s832_s19, %s826_s11 }
 0x100   : > { %p835_p3 = por %p834_p2, %p833_p1 }
 0x102   : > { %p836_p5 = pnand %p835_p3, %p829_p0 }
 0x165   : > { %v517_v13 = vpop.permute.xlu0 %516 }
 0x166   : > { %v522_v14 = vsel %vm520_vm3, %v420_v9, %v517_v13  ;;  %v531_v15 = vpop.permute.xlu1 %530 }
 0x167   : > { %525 = vst.msk [vmem:[%s301_s16 + $0x8] sm:$0xff] %vm523_vm4, %v522_v14 }
 0x169   : > { %v515_v16 = vpop.permute.xlu0 %514 }
 0x16a   : > { %v521_v17 = vsel %vm520_vm3, %v415_v12, %v515_v16  ;;  %v529_v18 = vpop.permute.xlu1 %528 }
 0x16b   : > { %524 = vst.msk [vmem:[%s301_s16] sm:$0xff] %vm523_vm4, %v521_v17 }
 0x16c   : > { %839 = shalt.err (!%p836_p5)
}
 0x16d   : > { %s840_s15 = scalar_lea.hbm %s1065_s27, 256  ;;  %s844_s12 = scalar_lea.hbm %s1169_s5, 512 }
 0x16e   : > { %p841_p6 = scmp.ne.s32.totalorder %s1065_s27, %s840_s15  ;;  %p845_p10 = scmp.lt.u32.totalorder %s1065_s27, %s1169_s5 }
 0x16f   : > { %p846_p11 = scmp.lt.u32.totalorder %s844_s12, %s840_s15  ;;  %p848_p13 = scmp.lt.u32.totalorder %s840_s15, %s1065_s27 }
 0x170   : > { %p842_p7 = pnand %p841_p6, %p1020_p4 }
 0x171   : > { %p847_p12 = por %p846_p11, %p845_p10 }
 0x172   : > { %p843_p9 = pneg %p842_p7 }
 0x173   : > { %p849_p0 = por %p848_p13, %p847_p12 }
 0x175   : > { %p850_p1 = pnand %p849_p0, %p843_p9 }
 0x177   : > { %853 = shalt.err (!%p850_p1)
}
 0x178   : > { %s942_s11 = smov 128   ;;  %s943_s19 = smov 8   ;;  %v535_v19 = vpop.permute.xlu0 %534  ;;  %v537_v21 = vpop.permute.xlu1 %536 }
 0x179   : > { %761 = dma.vmem_to_hbm [thread:$0]  (%p1020_p4), %s1058_s17, 256, %s1065_s27, %s546_s8, %s942_s11, %s942_s11, %s943_s19   ;;  %v540_v20 = vsel %vm523_vm4, %v529_v18, %v535_v19  ;;  %v541_v22 = vsel %vm523_vm4, %v531_v15, %v537_v21 }
 0x17a   : > { %543 = vst.msk [vmem:[%s1068_s28] sm:$0xff] %vm542_vm5, %v540_v20  ;;  %s1174_s18 = sshll.u32 %s928_s24, 8  ;;  %544 = vst.msk [vmem:[%s1068_s28 + $0x8] sm:$0xff] %vm542_vm5, %v541_v22  ;;  %s551_s17 = scalar_lea.sflag [#allocation5], %s1053_s14 }
 0x17b   : > { %s1110_s20 = scalar_lea.hbm %s1170_s6, %s1174_s18  ;;  %s854_s27 = scalar_lea.vmem %s1101_s30, 256 }
 0x17c   : > { %p855_p2 = scmp.ne.s32.totalorder %s1101_s30, %s854_s27  ;;  %s944_s8 = smov [#allocation4]  }
 0x17d   : > { %s858_s12 = sshll.u32 %s944_s8, 4  ;;  %s859_s12 = int_to_ptr.vmem [resolvable:$false] %s858_s12 }
 0x17e   : > { %p856_p3 = pnand %p855_p2, %p1020_p4  ;;  %s860_s13 = scalar_lea.vmem %s859_s12, 512 }
 0x17f   : > { %p861_p6 = scmp.lt.s32.totalorder %s1101_s30, %s859_s12  ;;  %p862_p7 = scmp.lt.s32.totalorder %s860_s13, %s854_s27 }
 0x180   : > { %p857_p5 = pneg %p856_p3 }
 0x181   : > { %p863_p9 = por %p862_p7, %p861_p6 }
 0x183   : > { %p864_p10 = pnand %p863_p9, %p857_p5 }
 0x185   : > { %867 = shalt.err (!%p864_p10)
}
 0x186   : > { %s868_s24 = scalar_lea.hbm %s1110_s20, 256  ;;  %s872_s15 = scalar_lea.hbm %s1170_s6, 512 }
 0x187   : > { %p869_p11 = scmp.ne.s32.totalorder %s1110_s20, %s868_s24  ;;  %p873_p0 = scmp.lt.u32.totalorder %s1110_s20, %s1170_s6 }
 0x188   : > { %p874_p1 = scmp.lt.u32.totalorder %s872_s15, %s868_s24  ;;  %p876_p3 = scmp.lt.u32.totalorder %s868_s24, %s1110_s20 }
 0x189   : > { %p870_p12 = pnand %p869_p11, %p1020_p4 }
 0x18a   : > { %p875_p2 = por %p874_p1, %p873_p0 }
 0x18b   : > { %p871_p13 = pneg %p870_p12 }
 0x18c   : > { %p877_p5 = por %p876_p3, %p875_p2 }
 0x18e   : > { %p878_p6 = pnand %p877_p5, %p871_p13 }
 0x190   : > { %881 = shalt.err (!%p878_p6)
}
 0x191   : > { %762 = dma.vmem_to_hbm [thread:$0]  (%p1020_p4), %s1101_s30, 256, %s1110_s20, %s551_s17, %s942_s11, %s942_s11, %s943_s19  }
 0x192 PF: > { %p772_p7 = scmp.ge.s32.totalorder %s936_s26, 2  ;;  %s599_s27 = sand.u32 1, %s916_s21  }
 0x193   : > { %s600_s12 = scalar_lea.sflag [#allocation3], %s599_s27 }
 0x194   : > { %p766_p9 = pnand %p772_p7, %p1027_p8 }
 0x196   : > { %907 = dma.done.wait (!%p766_p9), %s600_s12, 256  }
 0x197   : > { %909 = vsyncadd (!%p766_p9), %s600_s12, 4294967040  ;;  %s609_s7 = scalar_lea.sflag [#allocation5], %s599_s27 }
 0x198   : > { %911 = dma.done.wait (!%p766_p9), %s609_s7, 256  }
 0x199   : > { %913 = vsyncadd (!%p766_p9), %s609_s7, 4294967040  ;;  %s23_s26 = sadd.s32 1, %s936_s26   ;;  %s1175_s21 = smov %s920_s22 }
 0x19a   : > { %p20_p10 = scmp.ge.s32.totalorder %s23_s26, 4   ;;  %s1176_s22 = smov %s924_s23 }
 0x19b   : > { %s1177_s23 = smov %s1033_s10  ;;  %s1178_s24 = smov %s932_s25 }
 0x19c   : > { %s1179_s25 = smov %s1181_s29  ;;  %22 = sbr.rel (!%p20_p10) target bundleno = 6 (0x6), region = 95 }
 0x1a3   :  { %614 = vsyncpa [#allocation3], 1 }
 0x1a4   :  { %616 = vsyncpa [#allocation3 + $0x1], 1 }
 0x1a5   :  { %617 = vsyncpa [#allocation5], 1 }
 0x1a6   :  { %619 = vsyncpa [#allocation5 + $0x1], 1 }

</bundles_post_ra>
